<compile_context>
chip_gen: v5e
topology: v5e:2x2
jax: 0.10.0
libtpu: 0.0.40
codegen_flags: <defaults>
</compile_context>

<pallas_src>
import functools
import math

import jax
import jax.numpy as jnp
from jax.experimental import pallas as pl
from jax.experimental.pallas import tpu as pltpu


def _rs_kernel(sigma, inv_n, s_blk, x_ref, noise_ref, w_ref, b_ref, o_ref):
    """One grid step = `s_blk` Monte-Carlo samples batched into the matmul M dim.

    x_ref    : (s_blk*B, D) f32   -- x replicated s_blk times (row j*B+b = x[b])
    noise_ref: (s_blk*B, D) f32   -- this block's Gaussian draws
    w_ref    : (D, N)       bf16
    b_ref    : (1, N)       f32
    o_ref    : (B, N)       f32   -- resident across the sample axis (accumulator)
    """
    s = pl.program_id(0)

    @pl.when(s == 0)
    def _():
        o_ref[...] = jnp.zeros_like(o_ref)

    # Noisy activations for s_blk samples at once.
    noisy = x_ref[...] + sigma * noise_ref[...]                  # (s_blk*B, D) f32

    # bf16 MXU operands, f32 accumulation.
    logits = jnp.dot(
        noisy.astype(jnp.bfloat16),
        w_ref[...],
        preferred_element_type=jnp.float32,
    )                                                            # (s_blk*B, N)

    B, N = o_ref.shape
    o_ref[...] += logits.reshape(s_blk, B, N).sum(axis=0)        # reduce samples

    # Bias add + averaging hoisted out of the sample loop (last step only).
    @pl.when(s == pl.num_programs(0) - 1)
    def _():
        o_ref[...] = o_ref[...] * inv_n + b_ref[...]


def _choose_sample_block(batch, n_sample, target_rows=256):
    """Largest divisor of n_sample such that batch * s_blk <= target_rows."""
    s_blk = max(1, min(n_sample, target_rows // max(batch, 1)))
    while n_sample % s_blk:
        s_blk -= 1
    return s_blk


def rs_model_forward(x_nchw, w, b, *, sigma=0.1, n_sample=100, seed=0, noise=None):
    """Randomized-smoothing forward: mean over n_sample noisy linear passes.

    x_nchw : (B, C, H, W) float32
    w      : (C*H*W, N)   float32 (cast to bf16 for the MXU)
    b      : (1, N)       float32
    noise  : optional (n_sample*B, C*H*W) f32 Gaussian draws; reshaped as
             (n_sample, B, D) row-major.  If None, drawn from PRNGKey(seed).
    """
    B = x_nchw.shape[0]
    D = math.prod(x_nchw.shape[1:])
    N = w.shape[1]

    x_flat = x_nchw.reshape(B, D).astype(jnp.float32)

    if noise is None:
        noise = jax.random.normal(
            jax.random.PRNGKey(seed), (n_sample * B, D), dtype=jnp.float32)
    noise = noise.reshape(n_sample * B, D).astype(jnp.float32)

    s_blk = _choose_sample_block(B, n_sample)     # samples folded per grid step
    n_blocks = n_sample // s_blk
    rows = s_blk * B                              # matmul M dimension per step

    # x replicated once per sample-in-block: row j*B + b holds x[b].
    x_tiled = jnp.tile(x_flat, (s_blk, 1))        # (rows, D) f32
    w_bf16 = jnp.asarray(w, jnp.bfloat16)         # bf16 MXU operand, half VMEM
    b_f32 = jnp.asarray(b, jnp.float32).reshape(1, N)

    # Full-block specs only work at toy shapes; keep the per-step working set
    # well under VMEM (v7x scoped default ~32 MiB, 64 MiB physical).
    vmem_bytes = 3 * rows * D * 4 + 2 * D * N * 2
    assert vmem_bytes < 16 * 1024 * 1024, (
        "TODO(synk): add a K grid axis tiling D for realistic image/classifier "
        "sizes; full-block BlockSpecs only fit VMEM at toy shapes.")

    kernel = functools.partial(
        _rs_kernel, float(sigma), 1.0 / float(n_sample), int(s_blk))

    return pl.pallas_call(
        kernel,
        out_shape=jax.ShapeDtypeStruct((B, N), jnp.float32),
        grid=(n_blocks,),                                   # sample-block loop
        in_specs=[
            pl.BlockSpec((rows, D), lambda s: (0, 0)),      # tiled x (resident)
            pl.BlockSpec((rows, D), lambda s: (s, 0)),      # this block's noise
            pl.BlockSpec((D, N), lambda s: (0, 0)),         # W bf16 (resident)
            pl.BlockSpec((1, N), lambda s: (0, 0)),         # bias
        ],
        out_specs=pl.BlockSpec((B, N), lambda s: (0, 0)),   # resident accumulator
        compiler_params=pltpu.CompilerParams(
            dimension_semantics=("arbitrary",),             # reduction over samples
        ),
    )(x_tiled, noise, w_bf16, b_f32)


if __name__ == "__main__":
    # Small shapes consistent with the module's forward (NCHW image input).
    B, C, H, W_ = 2, 4, 16, 16
    NUM_CLASSES = 16
    SIGMA = 0.1
    N_SAMPLE = 32
    SEED = 0

    key = jax.random.PRNGKey(0)
    kx, kw, kb, kn = jax.random.split(key, 4)

    x = jax.random.normal(kx, (B, C, H, W_), dtype=jnp.float32)
    # Deterministic inner-model parameters (synthetic, not a checkpoint).
    w = jax.random.normal(kw, (C * H * W_, NUM_CLASSES), dtype=jnp.float32) * 0.02
    b = jax.random.normal(kb, (1, NUM_CLASSES), dtype=jnp.float32) * 0.01

    D = C * H * W_
    noise = jax.random.normal(kn, (N_SAMPLE * B, D), dtype=jnp.float32)

    out = rs_model_forward(x, w, b, sigma=SIGMA, n_sample=N_SAMPLE,
                           seed=SEED, noise=noise)
    jax.block_until_ready(out)

    # Exact reference with the same noise draws (high-precision f32 math).
    x_flat = x.reshape(B, D)
    noisy_all = x_flat[None, :, :] + SIGMA * noise.reshape(N_SAMPLE, B, D)
    ref = jnp.einsum("sbd,dn->sbn", noisy_all, w,
                     precision=jax.lax.Precision.HIGHEST).mean(axis=0) + b

    assert out.shape == (B, NUM_CLASSES)
    assert jnp.all(jnp.isfinite(out))
    # Tight check against the same-noise reference (bf16 MXU rounding bound).
    assert jnp.max(jnp.abs(out - ref)) < 2.5e-2
    # Zero-mean noise: smoothed output stays near the clean forward pass.
    clean = x_flat @ w + b
    assert jnp.max(jnp.abs(out - clean)) < 1.0

    print("KERNEL_OK")
</pallas_src>

<mosaic_0001>
module attributes {stable_mosaic.version = 11 : i64} {
  func.func @_rs_kernel(%arg0: i32, %arg1: memref<64x1024xf32, #tpu.memory_space<vmem>>, %arg2: memref<64x1024xf32, #tpu.memory_space<vmem>>, %arg3: memref<1024x16xbf16, #tpu.memory_space<vmem>>, %arg4: memref<1x16xf32, #tpu.memory_space<vmem>>, %arg5: memref<2x16xf32, #tpu.memory_space<vmem>>) attributes {dimension_semantics = [#tpu.dimension_semantics<arbitrary>], iteration_bounds = array<i64: 1>, scalar_prefetch = 0 : i64, scratch_operands = 0 : i64, tpu.core_type = #tpu.core_type<tc>, window_params = [{pipeline_mode = #tpu.pipeline_mode<synchronous>, transform_indices = @transform_0, window_bounds = array<i64: 64, 1024>}, {transform_indices = @transform_1, window_bounds = array<i64: 64, 1024>}, {pipeline_mode = #tpu.pipeline_mode<synchronous>, transform_indices = @transform_2, window_bounds = array<i64: 1024, 16>}, {pipeline_mode = #tpu.pipeline_mode<synchronous>, transform_indices = @transform_3, window_bounds = array<i64: 1, 16>}, {pipeline_mode = #tpu.pipeline_mode<synchronous>, transform_indices = @transform_4, window_bounds = array<i64: 2, 16>}]} {
    %c0_i32 = arith.constant 0 : i32
    %0 = arith.cmpi eq, %arg0, %c0_i32 : i32
    %1 = arith.extui %0 : i1 to i32
    %c0_i32_0 = arith.constant 0 : i32
    %2 = arith.cmpi ne, %1, %c0_i32_0 : i32
    scf.if %2 {
      %cst_14 = arith.constant 0.000000e+00 : f32
      %19 = vector.broadcast %cst_14 : f32 to vector<2x16xf32>
      %c0_15 = arith.constant 0 : index
      %c0_16 = arith.constant 0 : index
      %20 = vector.load %arg5[%c0_15, %c0_16] : memref<2x16xf32, #tpu.memory_space<vmem>>, vector<2x16xf32>
      tpu.vector_store %arg5[%c0_15, %c0_16], %19 {strides = array<i32>} : memref<2x16xf32, #tpu.memory_space<vmem>>, vector<2x16xf32>,
    } else {
    }
    %c0 = arith.constant 0 : index
    %c0_1 = arith.constant 0 : index
    %3 = vector.load %arg1[%c0, %c0_1] : memref<64x1024xf32, #tpu.memory_space<vmem>>, vector<64x1024xf32>
    %c0_2 = arith.constant 0 : index
    %c0_3 = arith.constant 0 : index
    %4 = vector.load %arg2[%c0_2, %c0_3] : memref<64x1024xf32, #tpu.memory_space<vmem>>, vector<64x1024xf32>
    %cst = arith.constant 1.000000e-01 : f32
    %5 = vector.broadcast %cst : f32 to vector<64x1024xf32>
    %6 = arith.mulf %5, %4 : vector<64x1024xf32>
    %7 = arith.addf %3, %6 : vector<64x1024xf32>
    %8 = arith.truncf %7 : vector<64x1024xf32> to vector<64x1024xbf16>
    %c0_4 = arith.constant 0 : index
    %c0_5 = arith.constant 0 : index
    %9 = vector.load %arg3[%c0_4, %c0_5] : memref<1024x16xbf16, #tpu.memory_space<vmem>>, vector<1024x16xbf16>
    %cst_6 = arith.constant dense<0.000000e+00> : vector<64x16xf32>
    %10 = tpu.matmul %8, %9, %cst_6 {dimension_numbers = #tpu.dot_dimension_numbers<[1], [0], [0], [1], [0, 0, 1, 1], [], []>} : vector<64x1024xbf16>, vector<1024x16xbf16>, vector<64x16xf32> -> vector<64x16xf32>
    %c0_7 = arith.constant 0 : index
    %c0_8 = arith.constant 0 : index
    %11 = vector.load %arg5[%c0_7, %c0_8] : memref<2x16xf32, #tpu.memory_space<vmem>>, vector<2x16xf32>
    %12 = vector.shape_cast %10 : vector<64x16xf32> to vector<32x2x16xf32>
    %cst_9 = arith.constant dense<0.000000e+00> : vector<2x16xf32>
    %13 = vector.multi_reduction <add>, %12, %cst_9 [0] : vector<32x2x16xf32> to vector<2x16xf32>
    %14 = arith.addf %11, %13 : vector<2x16xf32>
    %c0_10 = arith.constant 0 : index
    %c0_11 = arith.constant 0 : index
    %15 = vector.load %arg5[%c0_10, %c0_11] : memref<2x16xf32, #tpu.memory_space<vmem>>, vector<2x16xf32>
    tpu.vector_store %arg5[%c0_10, %c0_11], %14 {strides = array<i32>} : memref<2x16xf32, #tpu.memory_space<vmem>>, vector<2x16xf32>,
    %c0_i32_12 = arith.constant 0 : i32
    %16 = arith.cmpi eq, %arg0, %c0_i32_12 : i32
    %17 = arith.extui %16 : i1 to i32
    %c0_i32_13 = arith.constant 0 : i32
    %18 = arith.cmpi ne, %17, %c0_i32_13 : i32
    scf.if %18 {
      %c0_14 = arith.constant 0 : index
      %c0_15 = arith.constant 0 : index
      %19 = vector.load %arg5[%c0_14, %c0_15] : memref<2x16xf32, #tpu.memory_space<vmem>>, vector<2x16xf32>
      %cst_16 = arith.constant 3.125000e-02 : f32
      %20 = vector.broadcast %cst_16 : f32 to vector<2x16xf32>
      %21 = arith.mulf %19, %20 : vector<2x16xf32>
      %c0_17 = arith.constant 0 : index
      %c0_18 = arith.constant 0 : index
      %22 = vector.load %arg4[%c0_17, %c0_18] : memref<1x16xf32, #tpu.memory_space<vmem>>, vector<1x16xf32>
      %23 = vector.broadcast %22 : vector<1x16xf32> to vector<2x16xf32>
      %24 = arith.addf %21, %23 : vector<2x16xf32>
      %c0_19 = arith.constant 0 : index
      %c0_20 = arith.constant 0 : index
      %25 = vector.load %arg5[%c0_19, %c0_20] : memref<2x16xf32, #tpu.memory_space<vmem>>, vector<2x16xf32>
      tpu.vector_store %arg5[%c0_19, %c0_20], %24 {strides = array<i32>} : memref<2x16xf32, #tpu.memory_space<vmem>>, vector<2x16xf32>,
    } else {
    }
    return
  }
  func.func @transform_0(%arg0: i32) -> (i32, i32) {
    %c0_i32 = arith.constant 0 : i32
    %c0_i32_0 = arith.constant 0 : i32
    %c0_i32_1 = arith.constant 0 : i32
    return %c0_i32, %c0_i32_0 : i32, i32
  }
  func.func @transform_1(%arg0: i32) -> (i32, i32) {
    %c0_i32 = arith.constant 0 : i32
    %c0_i32_0 = arith.constant 0 : i32
    return %arg0, %c0_i32 : i32, i32
  }
  func.func @transform_2(%arg0: i32) -> (i32, i32) {
    %c0_i32 = arith.constant 0 : i32
    %c0_i32_0 = arith.constant 0 : i32
    %c0_i32_1 = arith.constant 0 : i32
    return %c0_i32, %c0_i32_0 : i32, i32
  }
  func.func @transform_3(%arg0: i32) -> (i32, i32) {
    %c0_i32 = arith.constant 0 : i32
    %c0_i32_0 = arith.constant 0 : i32
    %c0_i32_1 = arith.constant 0 : i32
    return %c0_i32, %c0_i32_0 : i32, i32
  }
  func.func @transform_4(%arg0: i32) -> (i32, i32) {
    %c0_i32 = arith.constant 0 : i32
    %c0_i32_0 = arith.constant 0 : i32
    %c0_i32_1 = arith.constant 0 : i32
    return %c0_i32, %c0_i32_0 : i32, i32
  }
}

</mosaic_0001>

<bundles_post_ra>
// kernel: tpu_custom_call.1
= control target key start
LH: loop header
LB: loop body
LE: loop exit
PB: predicated region body
PF: predicated region fallthrough
CT: control target
= control target key end

     0   :  { %9 = vsyncpa [#allocation3], 0  ;;  %s2110_s0 = inlined_call_operand.vmem [shape: f32[64,1024], index: 0, kind: input, shape index: {}]   ;;  %s2111_s1 = inlined_call_operand.hbm [shape: f32[64,1024], index: 1, kind: input, shape index: {}]   ;;  %s2112_s2 = inlined_call_operand.vmem [shape: bf16[1024,16], index: 2, kind: input, shape index: {}]   ;;  %s2113_s3 = inlined_call_operand.vmem [shape: f32[1,16], index: 3, kind: input, shape index: {}]   ;;  %s2114_s4 = inlined_call_operand.hbm [shape: f32[2,16], index: 4, kind: output, shape index: {}]  }
   0x1   :  { %10 = vsyncpa [#allocation4], 0  ;;  %s17_s17 = sshll.u32 %s2111_s1, 4  ;;  %s1601_s18 = smov [#allocation2]   ;;  %s18_s17 = int_to_ptr.hbm [resolvable:$true] %s17_s17 }
   0x2   :  { %s19_s19 = sshll.u32 %s1601_s18, 4  ;;  %s1602_s20 = smov 1024   ;;  %s20_s19 = int_to_ptr.vmem [resolvable:$true] %s19_s19 }
   0x3   :  { %s1603_s21 = smov 64  }
   0x4   :  { %25 = dma.hbm_to_vmem [thread:$0]  %s18_s17, 8192, %s20_s19, [#allocation3], %s1602_s20, %s1602_s20, %s1603_s21  }
   0x5   :  { %1597 = dma.done.wait [#allocation3], 8192  }
   0x6   :  { %1598 = vsyncadd [#allocation3], 4294959104  ;;  %v1486_v0 = vld [vmem:[%s2112_s2 + $0x38] sm:$0xff]  ;;  %v1485_v4 = vld [vmem:[%s2112_s2 + $0x30] sm:$0xff]  ;;  %vm38_vm0 = vcmask 123904   ;;  %s1605_s6 = smov [#allocation5]  }
   0x7   :  { %v1494_v1 = vld [vmem:[%s2112_s2 + $0x78] sm:$0xff]  ;;  %840 = vmatpush.bf16.msra.mxu0 %v1486_v0  ;;  %v1493_v5 = vld [vmem:[%s2112_s2 + $0x70] sm:$0xff]  ;;  %v1484_v8 = vld [vmem:[%s2112_s2 + $0x28] sm:$0xff]  ;;  %s1211_s7 = sshll.u32 %s1605_s6, 4  ;;  %s1213_s9 = sshll.u32 %s2114_s4, 4  ;;  %s1212_s7 = int_to_ptr.vmem [resolvable:$true] %s1211_s7  ;;  %s1214_s9 = int_to_ptr.hbm [resolvable:$true] %s1213_s9 }
   0x8   :  { %v1502_v2 = vld [vmem:[%s2112_s2 + $0xb8] sm:$0xff]  ;;  %869 = vmatpush.bf16.msra.mxu1 %v1494_v1  ;;  %v1501_v6 = vld [vmem:[%s2112_s2 + $0xb0] sm:$0xff]  ;;  %v1492_v9 = vld [vmem:[%s2112_s2 + $0x68] sm:$0xff] }
   0x9   :  { %v1510_v3 = vld [vmem:[%s2112_s2 + $0xf8] sm:$0xff]  ;;  %898 = vmatpush.bf16.msra.mxu2 %v1502_v2  ;;  %v1509_v7 = vld [vmem:[%s2112_s2 + $0xf0] sm:$0xff]  ;;  %v1500_v10 = vld [vmem:[%s2112_s2 + $0xa8] sm:$0xff] }
   0xa   :  { %927 = vmatpush.bf16.msra.mxu3 %v1510_v3  ;;  %v1508_v11 = vld [vmem:[%s2112_s2 + $0xe8] sm:$0xff]  ;;  %v1483_v12 = vld [vmem:[%s2112_s2 + $0x20] sm:$0xff]  ;;  %v1482_v16 = vld [vmem:[%s2112_s2 + $0x18] sm:$0xff] }
   0xb   :  { %841 = vmatpush.bf16.msra.mxu0 %v1485_v4  ;;  %v1491_v13 = vld [vmem:[%s2112_s2 + $0x60] sm:$0xff]  ;;  %v1490_v17 = vld [vmem:[%s2112_s2 + $0x58] sm:$0xff]  ;;  %v1481_v20 = vld [vmem:[%s2112_s2 + $0x10] sm:$0xff] }
   0xc   :  { %870 = vmatpush.bf16.msra.mxu1 %v1493_v5  ;;  %v1499_v14 = vld [vmem:[%s2112_s2 + $0xa0] sm:$0xff]  ;;  %v1498_v18 = vld [vmem:[%s2112_s2 + $0x98] sm:$0xff]  ;;  %v1489_v21 = vld [vmem:[%s2112_s2 + $0x50] sm:$0xff] }
   0xd   :  { %899 = vmatpush.bf16.msra.mxu2 %v1501_v6  ;;  %v1507_v15 = vld [vmem:[%s2112_s2 + $0xe0] sm:$0xff]  ;;  %v1506_v19 = vld [vmem:[%s2112_s2 + $0xd8] sm:$0xff]  ;;  %v1497_v23 = vld [vmem:[%s2112_s2 + $0x90] sm:$0xff] }
   0xe   :  { %928 = vmatpush.bf16.msra.mxu3 %v1509_v7  ;;  %v104_v22 = vld [vmem:[#allocation2] sm:$0xff]  ;;  %v1505_v24 = vld [vmem:[%s2112_s2 + $0xd0] sm:$0xff]  ;;  %v105_v26 = vld [vmem:[#allocation2 + $0x8] sm:$0xff] }
   0xf   :  { %842 = vmatpush.bf16.msra.mxu0 %v1484_v8  ;;  %v112_v25 = vld [vmem:[#allocation2 + $0x40] sm:$0xff]  ;;  %v113_v27 = vld [vmem:[#allocation2 + $0x48] sm:$0xff]  ;;  %v106_v28 = vld [vmem:[#allocation2 + $0x10] sm:$0xff]  ;;  %v168_v30 = vmul.f32 0.1, %v104_v22 }
  0x10   :  { %871 = vmatpush.bf16.msra.mxu1 %v1492_v9  ;;  %v40_v29 = vld [vmem:[%s2110_s0] sm:$0xff]  ;;  %v114_v31 = vld [vmem:[#allocation2 + $0x50] sm:$0xff]  ;;  %v107_v32 = vld [vmem:[#allocation2 + $0x18] sm:$0xff]  ;;  %v176_v37 = vmul.f32 0.1, %v112_v25 }
  0x11   :  { %900 = vmatpush.bf16.msra.mxu2 %v1500_v10  ;;  %v115_v33 = vld [vmem:[#allocation2 + $0x58] sm:$0xff]  ;;  %v1480_v34 = vld [vmem:[%s2112_s2 + $0x8] sm:$0xff]  ;;  %v48_v36 = vld [vmem:[%s2110_s0 + $0x40] sm:$0xff]  ;;  %v169_v43 = vmul.f32 0.1, %v105_v26  ;;  %v232_v52 = vadd.f32 %v168_v30, %v40_v29 }
  0x12   :  { %929 = vmatpush.bf16.msra.mxu3 %v1508_v11  ;;  %v1488_v35 = vld [vmem:[%s2112_s2 + $0x48] sm:$0xff]  ;;  %v42_v40 = vld [vmem:[%s2110_s0 + $0x10] sm:$0xff]  ;;  %v177_v44 = vmul.f32 0.1, %v113_v27  ;;  %v170_v45 = vmul.f32 0.1, %v106_v28  ;;  %v240_v53 = vadd.f32 %v176_v37, %v48_v36 }
  0x13   :  { %843 = vmatpush.bf16.msra.mxu0 %v1483_v12  ;;  %v41_v38 = vld [vmem:[%s2110_s0 + $0x8] sm:$0xff]  ;;  %v178_v46 = vmul.f32 0.1, %v114_v31  ;;  %v171_v47 = vmul.f32 0.1, %v107_v32  ;;  %v50_v49 = vld [vmem:[%s2110_s0 + $0x50] sm:$0xff] }
  0x14   :  { %872 = vmatpush.bf16.msra.mxu1 %v1491_v13  ;;  %v49_v39 = vld [vmem:[%s2110_s0 + $0x48] sm:$0xff]  ;;  %v179_v48 = vmul.f32 0.1, %v115_v33  ;;  %v43_v50 = vld [vmem:[%s2110_s0 + $0x18] sm:$0xff]  ;;  %v233_v54 = vadd.f32 %v169_v43, %v41_v38  ;;  %v234_v56 = vadd.f32 %v170_v45, %v42_v40  ;;  %v1479_v57 = vld [vmem:[%s2112_s2] sm:$0xff]  ;;  %v296_v2 = vpack.c.bf16 %v240_v53, %v232_v52 }
  0x15   :  { %901 = vmatpush.bf16.msra.mxu2 %v1499_v14  ;;  %v1496_v41 = vld [vmem:[%s2112_s2 + $0x88] sm:$0xff]  ;;  %v51_v51 = vld [vmem:[%s2110_s0 + $0x58] sm:$0xff]  ;;  %v241_v55 = vadd.f32 %v177_v44, %v49_v39  ;;  %v1487_v58 = vld [vmem:[%s2112_s2 + $0x40] sm:$0xff]  ;;  %v242_v59 = vadd.f32 %v178_v46, %v50_v49  ;;  %v235_v60 = vadd.f32 %v171_v47, %v43_v50 }
  0x16   :  { %930 = vmatpush.bf16.msra.mxu3 %v1507_v15  ;;  %v1504_v42 = vld [vmem:[%s2112_s2 + $0xc8] sm:$0xff]  ;;  %v243_v61 = vadd.f32 %v179_v48, %v51_v51  ;;  %v1495_v62 = vld [vmem:[%s2112_s2 + $0x80] sm:$0xff]  ;;  %v1534_v0 = vld [vmem:[%s2112_s2 + $0x1b8] sm:$0xff] }
  0x17   :  { %844 = vmatpush.bf16.msra.mxu0 %v1482_v16  ;;  %v1503_v63 = vld [vmem:[%s2112_s2 + $0xc0] sm:$0xff]  ;;  %v1518_v1 = vld [vmem:[%s2112_s2 + $0x138] sm:$0xff]  ;;  %v297_v3 = vpack.c.bf16 %v241_v55, %v233_v54  ;;  %v298_v4 = vpack.c.bf16 %v242_v59, %v234_v56  ;;  %v1533_v9 = vld [vmem:[%s2112_s2 + $0x1b0] sm:$0xff] }
  0x18   :  { %873 = vmatpush.bf16.msra.mxu1 %v1490_v17  ;;  %v299_v5 = vpack.c.bf16 %v243_v61, %v235_v60  ;;  %v1542_v6 = vld [vmem:[%s2112_s2 + $0x1f8] sm:$0xff]  ;;  %v120_v8 = vld [vmem:[#allocation2 + $0x80] sm:$0xff]  ;;  %v1517_v10 = vld [vmem:[%s2112_s2 + $0x130] sm:$0xff] }
  0x19   :  { %902 = vmatpush.bf16.msra.mxu2 %v1498_v18  ;;  %v1526_v7 = vld [vmem:[%s2112_s2 + $0x178] sm:$0xff]  ;;  %v128_v11 = vld [vmem:[#allocation2 + $0xc0] sm:$0xff]  ;;  %v121_v12 = vld [vmem:[#allocation2 + $0x88] sm:$0xff]  ;;  %v184_v16 = vmul.f32 0.1, %v120_v8 }
  0x1a   :  { %931 = vmatpush.bf16.msra.mxu3 %v1506_v19  ;;  %v129_v13 = vld [vmem:[#allocation2 + $0xc8] sm:$0xff]  ;;  %v1541_v14 = vld [vmem:[%s2112_s2 + $0x1f0] sm:$0xff]  ;;  %v192_v18 = vmul.f32 0.1, %v128_v11  ;;  %v56_v22 = vld [vmem:[%s2110_s0 + $0x80] sm:$0xff] }
  0x1b   :  { %845 = vmatpush.bf16.msra.mxu0 %v1481_v20  ;;  %v1525_v15 = vld [vmem:[%s2112_s2 + $0x170] sm:$0xff]  ;;  %v123_v20 = vld [vmem:[#allocation2 + $0x98] sm:$0xff]  ;;  %v65_v25 = vld [vmem:[%s2110_s0 + $0xc8] sm:$0xff]  ;;  %v185_v26 = vmul.f32 0.1, %v121_v12 }
  0x1c   :  { %874 = vmatpush.bf16.msra.mxu1 %v1489_v21  ;;  %v122_v17 = vld [vmem:[#allocation2 + $0x90] sm:$0xff]  ;;  %v131_v21 = vld [vmem:[#allocation2 + $0xd8] sm:$0xff]  ;;  %v193_v27 = vmul.f32 0.1, %v129_v13  ;;  %v1532_v28 = vld [vmem:[%s2112_s2 + $0x1a8] sm:$0xff] }
  0x1d   :  { %903 = vmatpush.bf16.msra.mxu2 %v1497_v23  ;;  %v130_v19 = vld [vmem:[#allocation2 + $0xd0] sm:$0xff]  ;;  %v64_v23 = vld [vmem:[%s2110_s0 + $0xc0] sm:$0xff]  ;;  %v1516_v29 = vld [vmem:[%s2112_s2 + $0x128] sm:$0xff]  ;;  %v186_v32 = vmul.f32 0.1, %v122_v17 }
  0x1e   :  { %932 = vmatpush.bf16.msra.mxu3 %v1505_v24  ;;  %v57_v24 = vld [vmem:[%s2110_s0 + $0x88] sm:$0xff]  ;;  %v58_v30 = vld [vmem:[%s2110_s0 + $0x90] sm:$0xff]  ;;  %v59_v33 = vld [vmem:[%s2110_s0 + $0x98] sm:$0xff]  ;;  %v187_v36 = vmul.f32 0.1, %v123_v20  ;;  %v256_v43 = vadd.f32 %v192_v18, %v64_v23  ;;  %v257_v45 = vadd.f32 %v193_v27, %v65_v25 }
  0x1f   :  { %846 = vmatpush.bf16.msra.mxu0 %v1480_v34  ;;  %v66_v31 = vld [vmem:[%s2110_s0 + $0xd0] sm:$0xff]  ;;  %v67_v34 = vld [vmem:[%s2110_s0 + $0xd8] sm:$0xff]  ;;  %v195_v37 = vmul.f32 0.1, %v131_v21  ;;  %v1540_v38 = vld [vmem:[%s2112_s2 + $0x1e8] sm:$0xff]  ;;  %v249_v44 = vadd.f32 %v185_v26, %v57_v24  ;;  %v250_v46 = vadd.f32 %v186_v32, %v58_v30 }
  0x20   :  { %875 = vmatpush.bf16.msra.mxu1 %v1488_v35  ;;  %v194_v35 = vmul.f32 0.1, %v130_v19  ;;  %v1524_v39 = vld [vmem:[%s2112_s2 + $0x168] sm:$0xff]  ;;  %v1531_v40 = vld [vmem:[%s2112_s2 + $0x1a0] sm:$0xff]  ;;  %v251_v48 = vadd.f32 %v187_v36, %v59_v33  ;;  %v1530_v52 = vld [vmem:[%s2112_s2 + $0x198] sm:$0xff] }
  0x21   :  { %904 = vmatpush.bf16.msra.mxu2 %v1496_v41  ;;  %v1515_v41 = vld [vmem:[%s2112_s2 + $0x120] sm:$0xff]  ;;  %v259_v49 = vadd.f32 %v195_v37, %v67_v34  ;;  %v1514_v53 = vld [vmem:[%s2112_s2 + $0x118] sm:$0xff]  ;;  %v305_v55 = vpack.c.bf16 %v257_v45, %v249_v44  ;;  %v1537_v8 = vld [vmem:[%s2112_s2 + $0x1d0] sm:$0xff] }
  0x22   :  { %933 = vmatpush.bf16.msra.mxu3 %v1504_v42  ;;  %v248_v42 = vadd.f32 %v184_v16, %v56_v22  ;;  %v258_v47 = vadd.f32 %v194_v35, %v66_v31  ;;  %v1539_v50 = vld [vmem:[%s2112_s2 + $0x1e0] sm:$0xff]  ;;  %v1538_v59 = vld [vmem:[%s2112_s2 + $0x1d8] sm:$0xff]  ;;  %v73_v12 = vld [vmem:[%s2110_s0 + $0x108] sm:$0xff] }
  0x23   :  { %847 = vmatpush.bf16.msra.mxu0 %v1479_v57  ;;  %v1523_v51 = vld [vmem:[%s2112_s2 + $0x160] sm:$0xff]  ;;  %v307_v57 = vpack.c.bf16 %v259_v49, %v251_v48  ;;  %v1522_v60 = vld [vmem:[%s2112_s2 + $0x158] sm:$0xff]  ;;  %v81_v13 = vld [vmem:[%s2110_s0 + $0x148] sm:$0xff] }
  0x24   :  { %876 = vmatpush.bf16.msra.mxu1 %v1487_v58  ;;  %v304_v54 = vpack.c.bf16 %v256_v43, %v248_v42  ;;  %v306_v56 = vpack.c.bf16 %v258_v47, %v250_v46  ;;  %v136_v58 = vld [vmem:[#allocation2 + $0x100] sm:$0xff]  ;;  %v1512_v16 = vld [vmem:[%s2112_s2 + $0x108] sm:$0xff]  ;;  %v74_v18 = vld [vmem:[%s2110_s0 + $0x110] sm:$0xff] }
  0x25   :  { %905 = vmatpush.bf16.msra.mxu2 %v1495_v62  ;;  %v144_v61 = vld [vmem:[#allocation2 + $0x140] sm:$0xff]  ;;  %v1529_v62 = vld [vmem:[%s2112_s2 + $0x190] sm:$0xff]  ;;  %v75_v21 = vld [vmem:[%s2110_s0 + $0x118] sm:$0xff] }
  0x26   :  { %934 = vmatpush.bf16.msra.mxu3 %v1503_v63  ;;  %848 = vmatmul.bf16.vlgmr.msra.gmra.mxu0 %v296_v2  ;;  %v1513_v63 = vld [vmem:[%s2112_s2 + $0x110] sm:$0xff]  ;;  %v200_v2 = vmul.f32 0.1, %v136_v58  ;;  %v80_v11 = vld [vmem:[%s2110_s0 + $0x140] sm:$0xff]  ;;  %v83_v25 = vld [vmem:[%s2110_s0 + $0x158] sm:$0xff] }
  0x27   :  { %956 = vmatpush.bf16.msrb.mxu0 %v1518_v1  ;;  %877 = vmatmul.bf16.vlgmr.msra.gmra.mxu1 %v297_v3  ;;  %v145_v1 = vld [vmem:[#allocation2 + $0x148] sm:$0xff]  ;;  %v138_v3 = vld [vmem:[#allocation2 + $0x110] sm:$0xff]  ;;  %v152_v44 = vld [vmem:[#allocation2 + $0x180] sm:$0xff] }
  0x28   :  { %906 = vmatmul.bf16.vlgmr.msra.gmra.mxu2 %v298_v4  ;;  %985 = vmatpush.bf16.msrb.mxu1 %v1526_v7  ;;  %v146_v4 = vld [vmem:[#allocation2 + $0x150] sm:$0xff]  ;;  %v147_v7 = vld [vmem:[#allocation2 + $0x158] sm:$0xff]  ;;  %v209_v17 = vmul.f32 0.1, %v145_v1  ;;  %v202_v20 = vmul.f32 0.1, %v138_v3 }
  0x29   :  { %1014 = vmatpush.bf16.msrb.mxu2 %v1534_v0  ;;  %935 = vmatmul.bf16.vlgmr.msra.gmra.mxu3 %v299_v5  ;;  %v137_v0 = vld [vmem:[#allocation2 + $0x108] sm:$0xff]  ;;  %v139_v5 = vld [vmem:[#allocation2 + $0x118] sm:$0xff]  ;;  %v82_v19 = vld [vmem:[%s2110_s0 + $0x150] sm:$0xff]  ;;  %v210_v22 = vmul.f32 0.1, %v146_v4 }
  0x2a   :  { %1043 = vmatpush.bf16.msrb.mxu3 %v1542_v6  ;;  %v208_v6 = vmul.f32 0.1, %v144_v61  ;;  %v203_v23 = vmul.f32 0.1, %v139_v5  ;;  %v211_v24 = vmul.f32 0.1, %v147_v7  ;;  %v273_v33 = vadd.f32 %v209_v17, %v81_v13 }
  0x2b   :  { %957 = vmatpush.bf16.msrb.mxu0 %v1517_v10  ;;  %v72_v10 = vld [vmem:[%s2110_s0 + $0x100] sm:$0xff]  ;;  %v1536_v26 = vld [vmem:[%s2112_s2 + $0x1c8] sm:$0xff]  ;;  %v266_v34 = vadd.f32 %v202_v20, %v74_v18  ;;  %v274_v35 = vadd.f32 %v210_v22, %v82_v19  ;;  %v154_v48 = vld [vmem:[#allocation2 + $0x190] sm:$0xff]  ;;  %v216_v49 = vmul.f32 0.1, %v152_v44 }
  0x2c   :  { %986 = vmatpush.bf16.msrb.mxu1 %v1525_v15  ;;  %v1528_v15 = vld [vmem:[%s2112_s2 + $0x188] sm:$0xff]  ;;  %v264_v30 = vadd.f32 %v200_v2, %v72_v10  ;;  %v272_v31 = vadd.f32 %v208_v6, %v80_v11  ;;  %v267_v36 = vadd.f32 %v203_v23, %v75_v21  ;;  %v275_v37 = vadd.f32 %v211_v24, %v83_v25  ;;  %v160_v45 = vld [vmem:[#allocation2 + $0x1c0] sm:$0xff]  ;;  %v98_v1 = vld [vmem:[%s2110_s0 + $0x1d0] sm:$0xff] }
  0x2d   :  { %1015 = vmatpush.bf16.msrb.mxu2 %v1533_v9  ;;  %v1521_v9 = vld [vmem:[%s2112_s2 + $0x150] sm:$0xff]  ;;  %v1520_v27 = vld [vmem:[%s2112_s2 + $0x148] sm:$0xff]  ;;  %v314_v42 = vpack.c.bf16 %v274_v35, %v266_v34  ;;  %v218_v61 = vmul.f32 0.1, %v154_v48  ;;  %v91_v2 = vld [vmem:[%s2110_s0 + $0x198] sm:$0xff] }
  0x2e   :  { %1044 = vmatpush.bf16.msrb.mxu3 %v1541_v14  ;;  %v201_v14 = vmul.f32 0.1, %v137_v0  ;;  %v315_v43 = vpack.c.bf16 %v275_v37, %v267_v36  ;;  %v153_v46 = vld [vmem:[#allocation2 + $0x188] sm:$0xff]  ;;  %v99_v3 = vld [vmem:[%s2110_s0 + $0x1d8] sm:$0xff]  ;;  %v116_v17 = vld [vmem:[#allocation2 + $0x60] sm:$0xff] }
  0x2f   :  { %958 = vmatpush.bf16.msrb.mxu0 %v1516_v29  ;;  %v1511_v29 = vld [vmem:[%s2112_s2 + $0x100] sm:$0xff]  ;;  %v161_v47 = vld [vmem:[#allocation2 + $0x1c8] sm:$0xff]  ;;  %v110_v20 = vld [vmem:[#allocation2 + $0x30] sm:$0xff] }
  0x30   :  { %987 = vmatpush.bf16.msrb.mxu1 %v1524_v39  ;;  %v265_v32 = vadd.f32 %v201_v14, %v73_v12  ;;  %v1519_v39 = vld [vmem:[%s2112_s2 + $0x140] sm:$0xff]  ;;  %v89_v58 = vld [vmem:[%s2110_s0 + $0x188] sm:$0xff]  ;;  %v118_v22 = vld [vmem:[#allocation2 + $0x70] sm:$0xff] }
  0x31   :  { %1016 = vmatpush.bf16.msrb.mxu2 %v1532_v28  ;;  %v1527_v28 = vld [vmem:[%s2112_s2 + $0x180] sm:$0xff]  ;;  %v109_v18 = vld [vmem:[#allocation2 + $0x28] sm:$0xff]  ;;  %v111_v23 = vld [vmem:[#allocation2 + $0x38] sm:$0xff]  ;;  %v182_v34 = vmul.f32 0.1, %v118_v22 }
  0x32   :  { %1045 = vmatpush.bf16.msrb.mxu3 %v1540_v38  ;;  %v1535_v38 = vld [vmem:[%s2112_s2 + $0x1c0] sm:$0xff]  ;;  %v117_v19 = vld [vmem:[#allocation2 + $0x68] sm:$0xff]  ;;  %v119_v24 = vld [vmem:[#allocation2 + $0x78] sm:$0xff]  ;;  %v175_v35 = vmul.f32 0.1, %v111_v23 }
  0x33   :  { %959 = vmatpush.bf16.msrb.mxu0 %v1515_v41  ;;  %v313_v41 = vpack.c.bf16 %v273_v33, %v265_v32  ;;  %v44_v25 = vld [vmem:[%s2110_s0 + $0x20] sm:$0xff]  ;;  %v46_v32 = vld [vmem:[%s2110_s0 + $0x30] sm:$0xff]  ;;  %v174_v33 = vmul.f32 0.1, %v110_v20  ;;  %v183_v36 = vmul.f32 0.1, %v119_v24 }
  0x34   :  { %988 = vmatpush.bf16.msrb.mxu1 %v1523_v51  ;;  %v155_v51 = vld [vmem:[#allocation2 + $0x198] sm:$0xff]  ;;  %v54_v37 = vld [vmem:[%s2110_s0 + $0x70] sm:$0xff]  ;;  %v140_v24 = vld [vmem:[#allocation2 + $0x120] sm:$0xff] }
  0x35   :  { %1017 = vmatpush.bf16.msrb.mxu2 %v1531_v40  ;;  %v312_v40 = vpack.c.bf16 %v272_v31, %v264_v30  ;;  %v45_v30 = vld [vmem:[%s2110_s0 + $0x28] sm:$0xff]  ;;  %v238_v44 = vadd.f32 %v174_v33, %v46_v32  ;;  %v151_v32 = vld [vmem:[#allocation2 + $0x178] sm:$0xff]  ;;  %v76_v33 = vld [vmem:[%s2110_s0 + $0x120] sm:$0xff] }
  0x36   :  { %1046 = vmatpush.bf16.msrb.mxu3 %v1539_v50  ;;  %853 = vmatmul.bf16.gmra.mxu0 %v304_v54  ;;  %v162_v50 = vld [vmem:[#allocation2 + $0x1d0] sm:$0xff]  ;;  %v96_v54 = vld [vmem:[%s2110_s0 + $0x1c0] sm:$0xff]  ;;  %v53_v31 = vld [vmem:[%s2110_s0 + $0x68] sm:$0xff] }
  0x37   :  { %960 = vmatpush.bf16.msrb.mxu0 %v1514_v53  ;;  %882 = vmatmul.bf16.gmra.mxu1 %v305_v55  ;;  %v88_v53 = vld [vmem:[%s2110_s0 + $0x180] sm:$0xff]  ;;  %v224_v55 = vmul.f32 0.1, %v160_v45  ;;  %v246_v45 = vadd.f32 %v182_v34, %v54_v37 }
  0x38   :  { %911 = vmatmul.bf16.gmra.mxu2 %v306_v56  ;;  %989 = vmatpush.bf16.msrb.mxu1 %v1522_v60  ;;  %v217_v56 = vmul.f32 0.1, %v153_v46  ;;  %v90_v60 = vld [vmem:[%s2110_s0 + $0x190] sm:$0xff]  ;;  %v280_v4 = vadd.f32 %v216_v49, %v88_v53  ;;  %v132_v53 = vld [vmem:[#allocation2 + $0xe0] sm:$0xff] }
  0x39   :  { %1018 = vmatpush.bf16.msrb.mxu2 %v1530_v52  ;;  %940 = vmatmul.bf16.gmra.mxu3 %v307_v57  ;;  %v163_v52 = vld [vmem:[#allocation2 + $0x1d8] sm:$0xff]  ;;  %v225_v57 = vmul.f32 0.1, %v161_v47  ;;  %v288_v5 = vadd.f32 %v224_v55, %v96_v54  ;;  %v125_v54 = vld [vmem:[#allocation2 + $0xa8] sm:$0xff]  ;;  %v84_v34 = vld [vmem:[%s2110_s0 + $0x160] sm:$0xff] }
  0x3a   :  { %1047 = vmatpush.bf16.msrb.mxu3 %v1538_v59  ;;  %v97_v59 = vld [vmem:[%s2110_s0 + $0x1c8] sm:$0xff]  ;;  %v227_v0 = vmul.f32 0.1, %v163_v52  ;;  %v281_v6 = vadd.f32 %v217_v56, %v89_v58  ;;  %v124_v52 = vld [vmem:[#allocation2 + $0xa0] sm:$0xff]  ;;  %v126_v56 = vld [vmem:[#allocation2 + $0xb0] sm:$0xff] }
  0x3b   :  { %961 = vmatpush.bf16.msrb.mxu0 %v1513_v63  ;;  %v219_v63 = vmul.f32 0.1, %v155_v51  ;;  %v289_v7 = vadd.f32 %v225_v57, %v97_v59  ;;  %v320_v12 = vpack.c.bf16 %v288_v5, %v280_v4  ;;  %v133_v55 = vld [vmem:[#allocation2 + $0xe8] sm:$0xff]  ;;  %v188_v57 = vmul.f32 0.1, %v124_v52  ;;  %v134_v58 = vld [vmem:[#allocation2 + $0xf0] sm:$0xff] }
  0x3c   :  { %990 = vmatpush.bf16.msrb.mxu1 %v1521_v9  ;;  %v291_v11 = vadd.f32 %v227_v0, %v99_v3  ;;  %v127_v59 = vld [vmem:[#allocation2 + $0xb8] sm:$0xff]  ;;  %v189_v0 = vmul.f32 0.1, %v125_v54  ;;  %v69_v3 = vld [vmem:[%s2110_s0 + $0xe8] sm:$0xff]  ;;  %v62_v4 = vld [vmem:[%s2110_s0 + $0xb0] sm:$0xff] }
  0x3d   :  { %1019 = vmatpush.bf16.msrb.mxu2 %v1529_v62  ;;  %v226_v62 = vmul.f32 0.1, %v162_v50  ;;  %v283_v10 = vadd.f32 %v219_v63, %v91_v2  ;;  %v321_v13 = vpack.c.bf16 %v289_v7, %v281_v6  ;;  %v302_v50 = vpack.c.bf16 %v246_v45, %v238_v44  ;;  %v61_v2 = vld [vmem:[%s2110_s0 + $0xa8] sm:$0xff]  ;;  %v86_v45 = vld [vmem:[%s2110_s0 + $0x170] sm:$0xff] }
  0x3e   :  { %1048 = vmatpush.bf16.msrb.mxu3 %v1537_v8  ;;  %v282_v8 = vadd.f32 %v218_v61, %v90_v60  ;;  %v135_v60 = vld [vmem:[#allocation2 + $0xf8] sm:$0xff]  ;;  %v60_v61 = vld [vmem:[%s2110_s0 + $0xa0] sm:$0xff]  ;;  %v196_v63 = vmul.f32 0.1, %v132_v53  ;;  %v190_v5 = vmul.f32 0.1, %v126_v56 }
  0x3f   :  { %962 = vmatpush.bf16.msrb.mxu0 %v1512_v16  ;;  %v290_v9 = vadd.f32 %v226_v62, %v98_v1  ;;  %v108_v16 = vld [vmem:[#allocation2 + $0x20] sm:$0xff]  ;;  %v197_v1 = vmul.f32 0.1, %v133_v55  ;;  %v198_v6 = vmul.f32 0.1, %v134_v58 }
  0x40   :  { %991 = vmatpush.bf16.msrb.mxu1 %v1520_v27  ;;  %v172_v21 = vmul.f32 0.1, %v108_v16  ;;  %v180_v27 = vmul.f32 0.1, %v116_v17  ;;  %v68_v62 = vld [vmem:[%s2110_s0 + $0xe0] sm:$0xff]  ;;  %v254_v16 = vadd.f32 %v190_v5, %v62_v4  ;;  %v167_v4 = vld [vmem:[#allocation2 + $0x1f8] sm:$0xff] }
  0x41   :  { %1020 = vmatpush.bf16.msrb.mxu2 %v1528_v15  ;;  %v322_v14 = vpack.c.bf16 %v290_v9, %v282_v8  ;;  %v323_v15 = vpack.c.bf16 %v291_v11, %v283_v10  ;;  %v191_v7 = vmul.f32 0.1, %v127_v59  ;;  %v199_v8 = vmul.f32 0.1, %v135_v60  ;;  %v70_v9 = vld [vmem:[%s2110_s0 + $0xf0] sm:$0xff]  ;;  %v63_v10 = vld [vmem:[%s2110_s0 + $0xb8] sm:$0xff] }
  0x42   :  { %1049 = vmatpush.bf16.msrb.mxu3 %v1536_v26  ;;  %v52_v26 = vld [vmem:[%s2110_s0 + $0x60] sm:$0xff]  ;;  %v71_v11 = vld [vmem:[%s2110_s0 + $0xf8] sm:$0xff]  ;;  %v262_v17 = vadd.f32 %v198_v6, %v70_v9  ;;  %v215_v44 = vmul.f32 0.1, %v151_v32 }
  0x43   :  { %963 = vmatpush.bf16.msrb.mxu0 %v1511_v29  ;;  %v181_v29 = vmul.f32 0.1, %v117_v19  ;;  %v263_v19 = vadd.f32 %v199_v8, %v71_v11  ;;  %v156_v60 = vld [vmem:[#allocation2 + $0x1a0] sm:$0xff]  ;;  %v101_v11 = vld [vmem:[%s2110_s0 + $0x1e8] sm:$0xff] }
  0x44   :  { %992 = vmatpush.bf16.msrb.mxu1 %v1519_v39  ;;  %v55_v39 = vld [vmem:[%s2110_s0 + $0x78] sm:$0xff]  ;;  %v310_v22 = vpack.c.bf16 %v262_v17, %v254_v16  ;;  %v92_v5 = vld [vmem:[%s2110_s0 + $0x1a0] sm:$0xff]  ;;  %v231_v16 = vmul.f32 0.1, %v167_v4  ;;  %v102_v17 = vld [vmem:[%s2110_s0 + $0x1f0] sm:$0xff] }
  0x45   :  { %1021 = vmatpush.bf16.msrb.mxu2 %v1527_v28  ;;  %v173_v28 = vmul.f32 0.1, %v109_v18  ;;  %v247_v47 = vadd.f32 %v183_v36, %v55_v39  ;;  %v255_v18 = vadd.f32 %v191_v7, %v63_v10  ;;  %v85_v39 = vld [vmem:[%s2110_s0 + $0x168] sm:$0xff]  ;;  %v100_v6 = vld [vmem:[%s2110_s0 + $0x1e0] sm:$0xff] }
  0x46   :  { %1050 = vmatpush.bf16.msrb.mxu3 %v1535_v38  ;;  %858 = vmatmul.bf16.gmra.mxu0 %v312_v40  ;;  %v47_v38 = vld [vmem:[%s2110_s0 + $0x38] sm:$0xff]  ;;  %v236_v40 = vadd.f32 %v172_v21, %v44_v25  ;;  %v148_v25 = vld [vmem:[#allocation2 + $0x160] sm:$0xff]  ;;  %v93_v10 = vld [vmem:[%s2110_s0 + $0x1a8] sm:$0xff] }
  0x47   :  { %887 = vmatmul.bf16.gmra.mxu1 %v313_v41  ;;  %v244_v41 = vadd.f32 %v180_v27, %v52_v26  ;;  %v239_v46 = vadd.f32 %v175_v35, %v47_v38  ;;  %v311_v23 = vpack.c.bf16 %v263_v19, %v255_v18  ;;  %v141_v26 = vld [vmem:[#allocation2 + $0x128] sm:$0xff]  ;;  %v212_v35 = vmul.f32 0.1, %v148_v25  ;;  %v95_v18 = vld [vmem:[%s2110_s0 + $0x1b8] sm:$0xff] }
  0x48   :  { %916 = vmatmul.bf16.gmra.mxu2 %v314_v42  ;;  %v237_v42 = vadd.f32 %v173_v28, %v45_v30  ;;  %v149_v27 = vld [vmem:[#allocation2 + $0x168] sm:$0xff]  ;;  %v142_v28 = vld [vmem:[#allocation2 + $0x130] sm:$0xff]  ;;  %v205_v36 = vmul.f32 0.1, %v141_v26  ;;  %v103_v19 = vld [vmem:[%s2110_s0 + $0x1f8] sm:$0xff] }
  0x49   :  { %945 = vmatmul.bf16.gmra.mxu3 %v315_v43  ;;  %v245_v43 = vadd.f32 %v181_v29, %v53_v31  ;;  %v300_v48 = vpack.c.bf16 %v244_v41, %v236_v40  ;;  %v303_v51 = vpack.c.bf16 %v247_v47, %v239_v46  ;;  %v204_v29 = vmul.f32 0.1, %v140_v24  ;;  %v150_v30 = vld [vmem:[#allocation2 + $0x170] sm:$0xff]  ;;  %v143_v31 = vld [vmem:[#allocation2 + $0x138] sm:$0xff]  ;;  %v77_v38 = vld [vmem:[%s2110_s0 + $0x128] sm:$0xff] }
  0x4a   :  { %v213_v37 = vmul.f32 0.1, %v149_v27  ;;  %v78_v40 = vld [vmem:[%s2110_s0 + $0x130] sm:$0xff]  ;;  %v206_v41 = vmul.f32 0.1, %v142_v28  ;;  %v79_v46 = vld [vmem:[%s2110_s0 + $0x138] sm:$0xff]  ;;  %v295_v27 = vadd.f32 %v231_v16, %v103_v19 }
  0x4b   :  { %v301_v49 = vpack.c.bf16 %v245_v43, %v237_v42  ;;  %v214_v42 = vmul.f32 0.1, %v150_v30  ;;  %v207_v43 = vmul.f32 0.1, %v143_v31  ;;  %v87_v47 = vld [vmem:[%s2110_s0 + $0x178] sm:$0xff] }
  0x4c   :  { %v270_v52 = vadd.f32 %v206_v41, %v78_v40  ;;  %v279_v55 = vadd.f32 %v215_v44, %v87_v47 }
  0x4d   :  { %v278_v53 = vadd.f32 %v214_v42, %v86_v45  ;;  %v271_v54 = vadd.f32 %v207_v43, %v79_v46 }
  0x4f   :  { %v318_v58 = vpack.c.bf16 %v278_v53, %v270_v52  ;;  %v319_v59 = vpack.c.bf16 %v279_v55, %v271_v54 }
  0x56   :  { %863 = vmatmul.bf16.gmra.mxu0 %v320_v12  ;;  %v252_v12 = vadd.f32 %v188_v57, %v60_v61  ;;  %v164_v61 = vld [vmem:[#allocation2 + $0x1e0] sm:$0xff] }
  0x57   :  { %892 = vmatmul.bf16.gmra.mxu1 %v321_v13  ;;  %v260_v13 = vadd.f32 %v196_v63, %v68_v62  ;;  %v157_v62 = vld [vmem:[#allocation2 + $0x1a8] sm:$0xff]  ;;  %v228_v7 = vmul.f32 0.1, %v164_v61 }
  0x58   :  { %921 = vmatmul.bf16.gmra.mxu2 %v322_v14  ;;  %v253_v14 = vadd.f32 %v189_v0, %v61_v2  ;;  %v165_v63 = vld [vmem:[#allocation2 + $0x1e8] sm:$0xff]  ;;  %v158_v0 = vld [vmem:[#allocation2 + $0x1b0] sm:$0xff]  ;;  %v221_v8 = vmul.f32 0.1, %v157_v62 }
  0x59   :  { %950 = vmatmul.bf16.gmra.mxu3 %v323_v15  ;;  %v261_v15 = vadd.f32 %v197_v1, %v69_v3  ;;  %v308_v20 = vpack.c.bf16 %v260_v13, %v252_v12  ;;  %v220_v1 = vmul.f32 0.1, %v156_v60  ;;  %v166_v2 = vld [vmem:[#allocation2 + $0x1f0] sm:$0xff]  ;;  %v159_v3 = vld [vmem:[#allocation2 + $0x1b8] sm:$0xff]  ;;  %v229_v9 = vmul.f32 0.1, %v165_v63 }
  0x5a   :  { %v94_v12 = vld [vmem:[%s2110_s0 + $0x1b0] sm:$0xff]  ;;  %v222_v13 = vmul.f32 0.1, %v158_v0 }
  0x5b   :  { %v309_v21 = vpack.c.bf16 %v261_v15, %v253_v14  ;;  %v230_v14 = vmul.f32 0.1, %v166_v2  ;;  %v223_v15 = vmul.f32 0.1, %v159_v3 }
  0x5c   :  { %v286_v24 = vadd.f32 %v222_v13, %v94_v12 }
  0x5d   :  { %v294_v25 = vadd.f32 %v230_v14, %v102_v17  ;;  %v287_v26 = vadd.f32 %v223_v15, %v95_v18 }
  0x5f   :  { %v326_v30 = vpack.c.bf16 %v294_v25, %v286_v24  ;;  %v327_v31 = vpack.c.bf16 %v295_v27, %v287_v26 }
  0x66   :  { %964 = vmatmul.bf16.vlgmr.msrb.gmra.mxu0 %v300_v48  ;;  %v268_v48 = vadd.f32 %v204_v29, %v76_v33 }
  0x67   :  { %993 = vmatmul.bf16.vlgmr.msrb.gmra.mxu1 %v301_v49  ;;  %v276_v49 = vadd.f32 %v212_v35, %v84_v34 }
  0x68   :  { %1022 = vmatmul.bf16.vlgmr.msrb.gmra.mxu2 %v302_v50  ;;  %v269_v50 = vadd.f32 %v205_v36, %v77_v38 }
  0x69   :  { %1051 = vmatmul.bf16.vlgmr.msrb.gmra.mxu3 %v303_v51  ;;  %v277_v51 = vadd.f32 %v213_v37, %v85_v39  ;;  %v316_v56 = vpack.c.bf16 %v276_v49, %v268_v48 }
  0x6b   :  { %v317_v57 = vpack.c.bf16 %v277_v51, %v269_v50 }
  0x76   :  { %969 = vmatmul.bf16.gmra.mxu0 %v308_v20  ;;  %v284_v20 = vadd.f32 %v220_v1, %v92_v5 }
  0x77   :  { %998 = vmatmul.bf16.gmra.mxu1 %v309_v21  ;;  %v292_v21 = vadd.f32 %v228_v7, %v100_v6 }
  0x78   :  { %1027 = vmatmul.bf16.gmra.mxu2 %v310_v22  ;;  %v285_v22 = vadd.f32 %v221_v8, %v93_v10 }
  0x79   :  { %1056 = vmatmul.bf16.gmra.mxu3 %v311_v23  ;;  %v293_v23 = vadd.f32 %v229_v9, %v101_v11  ;;  %v324_v28 = vpack.c.bf16 %v292_v21, %v284_v20 }
  0x7b   :  { %v325_v29 = vpack.c.bf16 %v293_v23, %v285_v22 }
  0x86   :  { %974 = vmatmul.bf16.gmra.mxu0 %v316_v56 }
  0x87   :  { %1003 = vmatmul.bf16.gmra.mxu1 %v317_v57 }
  0x88   :  { %1032 = vmatmul.bf16.gmra.mxu2 %v318_v58 }
  0x89   :  { %1061 = vmatmul.bf16.gmra.mxu3 %v319_v59 }
  0x96   :  { %979 = vmatmul.bf16.gmra.mxu0 %v324_v28 }
  0x97   :  { %1008 = vmatmul.bf16.gmra.mxu1 %v325_v29 }
  0x98   :  { %1037 = vmatmul.bf16.gmra.mxu2 %v326_v30 }
  0x99   :  { %1066 = vmatmul.bf16.gmra.mxu3 %v327_v31 }
  0xa3   :  { %v849_v32 = vpop.f32.mrf.mxu0 }
  0xa4   :  { %v878_v33 = vpop.f32.mrf.mxu1 }
  0xa5   :  { %v879_v62 = vadd.f32 %v878_v33, %v849_v32 }
  0xab   :  { %v907_v34 = vpop.f32.mrf.mxu2  ;;  %v851_v36 = vpop.f32.mrf.mxu0 }
  0xac   :  { %v936_v35 = vpop.f32.mrf.mxu3  ;;  %v880_v37 = vpop.f32.mrf.mxu1  ;;  %v908_v63 = vadd.f32 %v907_v34, %v879_v62 }
  0xad   :  { %v881_v5 = vadd.f32 %v880_v37, %v851_v36 }
  0xae   :  { %v937_v2 = vadd.f32 %v936_v35, %v908_v63 }
  0xb3   :  { %v909_v38 = vpop.f32.mrf.mxu2  ;;  %v854_v40 = vpop.f32.mrf.mxu0 }
  0xb4   :  { %v938_v39 = vpop.f32.mrf.mxu3  ;;  %v883_v41 = vpop.f32.mrf.mxu1  ;;  %v910_v7 = vadd.f32 %v909_v38, %v881_v5 }
  0xb5   :  { %v884_v15 = vadd.f32 %v883_v41, %v854_v40 }
  0xb6   :  { %v939_v11 = vadd.f32 %v938_v39, %v910_v7 }
  0xbb   :  { %v912_v42 = vpop.f32.mrf.mxu2  ;;  %v856_v44 = vpop.f32.mrf.mxu0 }
  0xbc   :  { %v941_v43 = vpop.f32.mrf.mxu3  ;;  %v885_v45 = vpop.f32.mrf.mxu1  ;;  %v913_v18 = vadd.f32 %v912_v42, %v884_v15 }
  0xbd   :  { %v886_v34 = vadd.f32 %v885_v45, %v856_v44 }
  0xbe   :  { %v942_v28 = vadd.f32 %v941_v43, %v913_v18 }
  0xc3   :  { %v914_v46 = vpop.f32.mrf.mxu2  ;;  %v2020_v48 = vpop.f32.mrf.mxu0 }
  0xc4   :  { %v2018_v47 = vpop.f32.mrf.mxu3  ;;  %v2022_v49 = vpop.f32.mrf.mxu1  ;;  %v915_v39 = vadd.f32 %v914_v46, %v886_v34 }
  0xc6   :  { %v944_v44 = vadd.f32 %v2018_v47, %v915_v39  ;;  %v1604_v39 = vmov 0.0  }
  0xc7   :  { %39 = vst.msk [vmem:[#allocation5] sm:$0x3] %vm38_vm0, %v1604_v39 }
  0xcb   :  { %v2024_v50 = vpop.f32.mrf.mxu2  ;;  %v2028_v52 = vpop.f32.mrf.mxu0 }
  0xcc   :  { %v2026_v51 = vpop.f32.mrf.mxu3  ;;  %v2030_v53 = vpop.f32.mrf.mxu1 }
  0xd3   :  { %v2032_v54 = vpop.f32.mrf.mxu2  ;;  %v2036_v56 = vpop.f32.mrf.mxu0 }
  0xd4   :  { %v2034_v55 = vpop.f32.mrf.mxu3  ;;  %v2038_v57 = vpop.f32.mrf.mxu1 }
  0xdb   :  { %v2040_v58 = vpop.f32.mrf.mxu2  ;;  %v2044_v60 = vpop.f32.mrf.mxu0 }
  0xdc   :  { %v2042_v59 = vpop.f32.mrf.mxu3  ;;  %v2046_v61 = vpop.f32.mrf.mxu1 }
  0xe3   :  { %v2048_v0 = vpop.f32.mrf.mxu2  ;;  %v965_v3 = vpop.f32.mrf.mxu0 }
  0xe4   :  { %v2050_v1 = vpop.f32.mrf.mxu3  ;;  %v994_v4 = vpop.f32.mrf.mxu1  ;;  %v966_v6 = vadd.f32 %v965_v3, %v937_v2 }
  0xe6   :  { %v995_v8 = vadd.f32 %v994_v4, %v966_v6 }
  0xeb   :  { %v1023_v9 = vpop.f32.mrf.mxu2  ;;  %v967_v13 = vpop.f32.mrf.mxu0 }
  0xec   :  { %v1052_v10 = vpop.f32.mrf.mxu3  ;;  %v1024_v12 = vadd.f32 %v1023_v9, %v995_v8  ;;  %v996_v14 = vpop.f32.mrf.mxu1  ;;  %v968_v17 = vadd.f32 %v967_v13, %v939_v11  ;;  %v889_v9 = vadd.f32 %v2022_v49, %v2020_v48 }
  0xee   :  { %v1053_v16 = vadd.f32 %v1052_v10, %v1024_v12  ;;  %v997_v24 = vadd.f32 %v996_v14, %v968_v17  ;;  %v918_v14 = vadd.f32 %v2024_v50, %v889_v9 }
  0xf0   :  { %v1081_v19 = vrot.slane %v1053_v16, 2  ;;  %v1082_v20 = vrot.slane %v1053_v16, 4  ;;  %v1083_v21 = vrot.slane %v1053_v16, 6  ;;  %v1130_v22 = vsel %vm38_vm0, %v1053_v16, 0.0 }
  0xf1   :  { %v947_v48 = vadd.f32 %v2026_v51, %v918_v14 }
  0xf2   :  { %v1131_v23 = vsel %vm38_vm0, %v1081_v19, 0.0  ;;  %v1133_v29 = vsel %vm38_vm0, %v1082_v20, 0.0  ;;  %v1135_v35 = vsel %vm38_vm0, %v1083_v21, 0.0 }
  0xf3   :  { %v1132_v25 = vadd.f32 %v1131_v23, %v1130_v22  ;;  %v1025_v26 = vpop.f32.mrf.mxu2  ;;  %v970_v31 = vpop.f32.mrf.mxu0 }
  0xf4   :  { %v1054_v27 = vpop.f32.mrf.mxu3  ;;  %v1026_v30 = vadd.f32 %v1025_v26, %v997_v24  ;;  %v999_v32 = vpop.f32.mrf.mxu1  ;;  %v971_v37 = vadd.f32 %v970_v31, %v942_v28 }
  0xf5   :  { %v1134_v33 = vadd.f32 %v1133_v29, %v1132_v25 }
  0xf6   :  { %v1055_v36 = vadd.f32 %v1054_v27, %v1026_v30  ;;  %v1000_v2 = vadd.f32 %v999_v32, %v971_v37  ;;  %v891_v27 = vadd.f32 %v2030_v53, %v2028_v52 }
  0xf7   :  { %v1136_v38 = vadd.f32 %v1135_v35, %v1134_v33 }
  0xf8   :  { %v1084_v40 = vrot.slane %v1055_v36, 2  ;;  %v1085_v41 = vrot.slane %v1055_v36, 4  ;;  %v1137_v42 = vsel %vm38_vm0, %v1055_v36, 0.0  ;;  %v1086_v63 = vrot.slane %v1055_v36, 6 }
  0xf9   :  { %v1138_v62 = vadd.f32 %v1137_v42, %v1136_v38  ;;  %v920_v32 = vadd.f32 %v2032_v54, %v891_v27 }
  0xfa   :  { %v1139_v43 = vsel %vm38_vm0, %v1084_v40, 0.0  ;;  %v1141_v45 = vsel %vm38_vm0, %v1085_v41, 0.0  ;;  %v1143_v10 = vsel %vm38_vm0, %v1086_v63, 0.0 }
  0xfb   :  { %v1140_v3 = vadd.f32 %v1139_v43, %v1138_v62  ;;  %v1028_v4 = vpop.f32.mrf.mxu2  ;;  %v972_v7 = vpop.f32.mrf.mxu0  ;;  %v949_v41 = vadd.f32 %v2034_v55, %v920_v32 }
  0xfc   :  { %v1057_v5 = vpop.f32.mrf.mxu3  ;;  %v1029_v6 = vadd.f32 %v1028_v4, %v1000_v2  ;;  %v1001_v8 = vpop.f32.mrf.mxu1  ;;  %v973_v12 = vadd.f32 %v972_v7, %v944_v44  ;;  %v894_v2 = vadd.f32 %v2038_v57, %v2036_v56 }
  0xfd   :  { %v1142_v46 = vadd.f32 %v1141_v45, %v1140_v3 }
  0xfe   :  { %v1058_v11 = vadd.f32 %v1057_v5, %v1029_v6  ;;  %v1002_v20 = vadd.f32 %v1001_v8, %v973_v12  ;;  %v923_v45 = vadd.f32 %v2040_v58, %v894_v2  ;;  %v896_v58 = vadd.f32 %v2046_v61, %v2044_v60 }
  0xff   :  { %v1144_v13 = vadd.f32 %v1143_v10, %v1142_v46 }
 0x100   :  { %v1087_v15 = vrot.slane %v1058_v11, 2  ;;  %v1088_v16 = vrot.slane %v1058_v11, 4  ;;  %v1145_v47 = vsel %vm38_vm0, %v1058_v11, 0.0  ;;  %v1089_v18 = vrot.slane %v1058_v11, 6 }
 0x101   :  { %v1146_v17 = vadd.f32 %v1145_v47, %v1144_v13  ;;  %v952_v56 = vadd.f32 %v2042_v59, %v923_v45 }
 0x102   :  { %v1147_v19 = vsel %vm38_vm0, %v1087_v15, 0.0  ;;  %v1149_v49 = vsel %vm38_vm0, %v1088_v16, 0.0  ;;  %v1151_v28 = vsel %vm38_vm0, %v1089_v18, 0.0 }
 0x103   :  { %v1148_v21 = vadd.f32 %v1147_v19, %v1146_v17  ;;  %v1030_v22 = vpop.f32.mrf.mxu2  ;;  %v975_v25 = vpop.f32.mrf.mxu0 }
 0x104   :  { %v1059_v23 = vpop.f32.mrf.mxu3  ;;  %v1031_v24 = vadd.f32 %v1030_v22, %v1002_v20  ;;  %v1004_v26 = vpop.f32.mrf.mxu1  ;;  %v976_v30 = vadd.f32 %v975_v25, %v947_v48 }
 0x105   :  { %v1150_v50 = vadd.f32 %v1149_v49, %v1148_v21  ;;  %v925_v21 = vadd.f32 %v2048_v0, %v896_v58 }
 0x106   :  { %v1060_v29 = vadd.f32 %v1059_v23, %v1031_v24  ;;  %v1005_v38 = vadd.f32 %v1004_v26, %v976_v30 }
 0x107   :  { %v1152_v31 = vadd.f32 %v1151_v28, %v1150_v50  ;;  %v954_v61 = vadd.f32 %v2050_v1, %v925_v21 }
 0x108   :  { %v1090_v33 = vrot.slane %v1060_v29, 2  ;;  %v1091_v34 = vrot.slane %v1060_v29, 4  ;;  %v1153_v51 = vsel %vm38_vm0, %v1060_v29, 0.0  ;;  %v1092_v36 = vrot.slane %v1060_v29, 6 }
 0x109   :  { %v1154_v35 = vadd.f32 %v1153_v51, %v1152_v31 }
 0x10a   :  { %v1155_v37 = vsel %vm38_vm0, %v1090_v33, 0.0  ;;  %v1157_v42 = vsel %vm38_vm0, %v1091_v34, 0.0  ;;  %v1159_v3 = vsel %vm38_vm0, %v1092_v36, 0.0 }
 0x10b   :  { %v1156_v52 = vadd.f32 %v1155_v37, %v1154_v35  ;;  %v1033_v53 = vpop.f32.mrf.mxu2  ;;  %v977_v62 = vpop.f32.mrf.mxu0 }
 0x10c   :  { %v1062_v40 = vpop.f32.mrf.mxu3  ;;  %v1034_v54 = vadd.f32 %v1033_v53, %v1005_v38  ;;  %v1006_v43 = vpop.f32.mrf.mxu1  ;;  %v978_v5 = vadd.f32 %v977_v62, %v949_v41 }
 0x10d   :  { %v1158_v63 = vadd.f32 %v1157_v42, %v1156_v52 }
 0x10e   :  { %v1063_v4 = vadd.f32 %v1062_v40, %v1034_v54  ;;  %v1007_v10 = vadd.f32 %v1006_v43, %v978_v5 }
 0x10f   :  { %v1160_v44 = vadd.f32 %v1159_v3, %v1158_v63 }
 0x110   :  { %v1093_v6 = vrot.slane %v1063_v4, 2  ;;  %v1094_v7 = vrot.slane %v1063_v4, 4  ;;  %v1161_v55 = vsel %vm38_vm0, %v1063_v4, 0.0  ;;  %v1095_v46 = vrot.slane %v1063_v4, 6 }
 0x111   :  { %v1162_v8 = vadd.f32 %v1161_v55, %v1160_v44 }
 0x112   :  { %v1163_v9 = vsel %vm38_vm0, %v1093_v6, 0.0  ;;  %v1165_v57 = vsel %vm38_vm0, %v1094_v7, 0.0  ;;  %v1167_v47 = vsel %vm38_vm0, %v1095_v46, 0.0  ;;  %v1072_v46 = vld [vmem:[#allocation5] sm:$0x3] }
 0x113   :  { %v1164_v11 = vadd.f32 %v1163_v9, %v1162_v8  ;;  %v1035_v12 = vpop.f32.mrf.mxu2  ;;  %v980_v15 = vpop.f32.mrf.mxu0 }
 0x114   :  { %v1064_v13 = vpop.f32.mrf.mxu3  ;;  %v1036_v14 = vadd.f32 %v1035_v12, %v1007_v10  ;;  %v981_v18 = vadd.f32 %v980_v15, %v952_v56  ;;  %v1009_v20 = vpop.f32.mrf.mxu1 }
 0x115   :  { %v1166_v16 = vadd.f32 %v1165_v57, %v1164_v11  ;;  %v1548_v11 = vld [vmem:[%s2113_s3] ss:$0 sm:$0xff] }
 0x116   :  { %v1065_v17 = vadd.f32 %v1064_v13, %v1036_v14  ;;  %v1010_v25 = vadd.f32 %v1009_v20, %v981_v18 }
 0x117   :  { %v1168_v19 = vadd.f32 %v1167_v47, %v1166_v16 }
 0x118   :  { %v1096_v22 = vrot.slane %v1065_v17, 2  ;;  %v1097_v23 = vrot.slane %v1065_v17, 4  ;;  %v1169_v59 = vsel %vm38_vm0, %v1065_v17, 0.0  ;;  %v1098_v49 = vrot.slane %v1065_v17, 6 }
 0x119   :  { %v1170_v48 = vadd.f32 %v1169_v59, %v1168_v19 }
 0x11a   :  { %v1171_v24 = vsel %vm38_vm0, %v1096_v22, 0.0  ;;  %v1173_v27 = vsel %vm38_vm0, %v1097_v23, 0.0  ;;  %v1175_v0 = vsel %vm38_vm0, %v1098_v49, 0.0 }
 0x11b   :  { %v1172_v26 = vadd.f32 %v1171_v24, %v1170_v48  ;;  %v1038_v50 = vpop.f32.mrf.mxu2  ;;  %v982_v29 = vpop.f32.mrf.mxu0 }
 0x11c   :  { %v1067_v60 = vpop.f32.mrf.mxu3  ;;  %v1039_v28 = vadd.f32 %v1038_v50, %v1010_v25  ;;  %v983_v32 = vadd.f32 %v982_v29, %v954_v61  ;;  %v1011_v37 = vpop.f32.mrf.mxu1 }
 0x11d   :  { %v1174_v30 = vadd.f32 %v1173_v27, %v1172_v26 }
 0x11e   :  { %v1068_v31 = vadd.f32 %v1067_v60, %v1039_v28  ;;  %v1012_v1 = vadd.f32 %v1011_v37, %v983_v32 }
 0x11f   :  { %v1176_v33 = vadd.f32 %v1175_v0, %v1174_v30 }
 0x120   :  { %v1099_v34 = vrot.slane %v1068_v31, 2  ;;  %v1100_v51 = vrot.slane %v1068_v31, 4  ;;  %v1177_v35 = vsel %vm38_vm0, %v1068_v31, 0.0  ;;  %v1101_v38 = vrot.slane %v1068_v31, 6 }
 0x121   :  { %v1178_v36 = vadd.f32 %v1177_v35, %v1176_v33 }
 0x122   :  { %v1179_v39 = vsel %vm38_vm0, %v1099_v34, 0.0  ;;  %v1181_v40 = vsel %vm38_vm0, %v1100_v51, 0.0  ;;  %v1183_v62 = vsel %vm38_vm0, %v1101_v38, 0.0 }
 0x123   :  { %v1180_v52 = vadd.f32 %v1179_v39, %v1178_v36  ;;  %v1040_v53 = vpop.f32.mrf.mxu2 }
 0x124   :  { %v1041_v41 = vadd.f32 %v1040_v53, %v1012_v1  ;;  %v1069_v54 = vpop.f32.mrf.mxu3 }
 0x125   :  { %v1182_v42 = vadd.f32 %v1181_v40, %v1180_v52 }
 0x126   :  { %v1070_v63 = vadd.f32 %v1069_v54, %v1041_v41 }
 0x127   :  { %v1184_v43 = vadd.f32 %v1183_v62, %v1182_v42 }
 0x128   :  { %v1102_v2 = vrot.slane %v1070_v63, 2  ;;  %v1103_v3 = vrot.slane %v1070_v63, 4  ;;  %v1185_v4 = vsel %vm38_vm0, %v1070_v63, 0.0  ;;  %v1104_v44 = vrot.slane %v1070_v63, 6 }
 0x129   :  { %v1186_v5 = vadd.f32 %v1185_v4, %v1184_v43 }
 0x12a   :  { %v1187_v45 = vsel %vm38_vm0, %v1102_v2, 0.0  ;;  %v1189_v7 = vsel %vm38_vm0, %v1103_v3, 0.0  ;;  %v1191_v8 = vsel %vm38_vm0, %v1104_v44, 0.0 }
 0x12b   :  { %v1188_v6 = vadd.f32 %v1187_v45, %v1186_v5 }
 0x12d   :  { %v1190_v55 = vadd.f32 %v1189_v7, %v1188_v6 }
 0x12f   :  { %v1192_v9 = vadd.f32 %v1191_v8, %v1190_v55 }
 0x131   :  { %v1193_v10 = vadd.f32 %v1192_v9, %v1072_v46 }
 0x133   :  { %1194 = vst.msk [vmem:[#allocation5] sm:$0x3] %vm38_vm0, %v1193_v10 }
 0x13a   :  { %v1198_v12 = vld [vmem:[#allocation5] sm:$0x3] }
 0x13b   :  { %v1199_v13 = vmul.f32 0.03125, %v1198_v12 }
 0x13d   :  { %v1204_v56 = vadd.f32 %v1548_v11, %v1199_v13 }
 0x13f   :  { %1205 = vst.msk [vmem:[#allocation5] sm:$0x3] %vm38_vm0, %v1204_v56 }
 0x140   :  { %1216 = dma.vmem_to_hbm [thread:$0]  %s1212_s7, 32, %s1214_s9, [#allocation4]  }
 0x141   :  { %1599 = dma.done.wait [#allocation4], 32  }
 0x142   :  { %1600 = vsyncadd [#allocation4], 4294967264 }
 0x143   :  { %1221 = vsyncpa [#allocation3], 1 }
 0x144   :  { %1222 = vsyncpa [#allocation4], 1 }

</bundles_post_ra>
